<compile_context>
chip_gen: v7x
topology: tpu7x:2x2x1
jax: 0.10.0
libtpu: 0.0.40
codegen_flags: <defaults>
</compile_context>

<pallas_src>
import jax
import jax.numpy as jnp
from jax import lax
from jax.experimental import pallas as pl
from jax.experimental.pallas import tpu as pltpu


def autopad(k, p=None):
    if p is None:
        p = k // 2 if isinstance(k, int) else [x // 2 for x in k]
    return p


def _round_up(a, b):
    return (a + b - 1) // b * b


def _conv_bn_silu_kernel(p_ref, w_ref, b_ref, o_ref, acc_ref):
    """One (tm, tk) @ (tk, C2p) MXU step; BN-bias + SiLU epilogue on last K step."""
    kt = pl.program_id(1)

    @pl.when(kt == 0)
    def _():
        acc_ref[...] = jnp.zeros_like(acc_ref)

    acc_ref[...] += jnp.dot(p_ref[...], w_ref[...],
                            preferred_element_type=jnp.float32)

    @pl.when(kt == pl.num_programs(1) - 1)
    def _():
        y = acc_ref[...] + b_ref[...]                       # BN bias (scale folded into W)
        o_ref[...] = (y * jax.nn.sigmoid(y)).astype(o_ref.dtype)   # SiLU


def conv_bn_silu(x, weight, gamma, beta, running_mean, running_var,
                 *, stride=1, padding=None, eps=1e-3, tm=512,
                 data_format="NCHW"):
    """Conv2d(bias=False, groups=1) + BatchNorm2d(eval) + SiLU.

    x: (N, C1, H, W) NCHW; weight: (C2, C1, k, k) OIHW (PyTorch layouts).
    Returns NCHW by default (module semantics); pass data_format="NHWC" to
    skip the final transpose (saves one full HBM pass of the output).
    """
    N, C1, H, W = x.shape
    C2, C1w, kh, kw = weight.shape
    assert C1 == C1w and kh == kw  # TODO(synk): grouped conv (g > 1) not implemented
    k = kh
    p = autopad(k, padding)
    s = stride

    H_out = (H + 2 * p - k) // s + 1
    W_out = (W + 2 * p - k) // s + 1
    M = N * H_out * W_out
    K = C1 * k * k

    # ---- im2col (plain-JAX glue) in bf16: halves HBM bytes of the patch slab.
    # TODO(synk): fuse the im2col into the kernel (halo DMA from a pl.ANY ref)
    # to remove the k*k read amplification entirely; bf16 halves it for now.
    x_pad = jnp.pad(x, ((0, 0), (0, 0), (p, p), (p, p))).astype(jnp.bfloat16)
    cols = []
    for ih in range(k):
        for iw in range(k):
            cols.append(x_pad[:, :, ih:ih + s * H_out:s, iw:iw + s * W_out:s])
    # (k*k, N, C1, Ho, Wo) -> (N, Ho, Wo, C1, k*k) -> (M, C1*k*k)
    patches = jnp.stack(cols, axis=0)
    patches = jnp.transpose(patches, (1, 3, 4, 2, 0))
    patches = patches.reshape(M, K)

    # ---- fold BatchNorm (eval / running-stats) into weight scale + bias.
    inv_std = 1.0 / jnp.sqrt(running_var.astype(jnp.float32) + eps)
    scale = gamma.astype(jnp.float32) * inv_std                       # (C2,)
    bias = beta.astype(jnp.float32) - running_mean.astype(jnp.float32) * scale

    # weight (C2, C1, k, k) -> (C1*k*k, C2), BN scale folded in (per out-channel).
    w_mat = weight.reshape(C2, K).T.astype(jnp.float32) * scale[None, :]

    # ---- lane-dense padding: K and C2 up to multiples of 128.
    C2p = _round_up(C2, 128)
    Kp = _round_up(K, 128)

    # K tile: largest of {512, 384, 256, 128} dividing Kp (bounds VMEM per step).
    for tk in (512, 384, 256, 128):
        if Kp % tk == 0:
            break

    # M tile: as big as useful, but keep >=2 grid steps when possible so v7x's
    # two TensorCores both get work (v5e/v6e: single TC, no downside).
    while tm > 256 and M <= tm:
        tm //= 2
    M_pad = _round_up(M, tm)

    patches = jnp.pad(patches, ((0, M_pad - M), (0, Kp - K)))
    w_mat = jnp.pad(w_mat, ((0, Kp - K), (0, C2p - C2))).astype(jnp.bfloat16)
    bias = jnp.pad(bias, (0, C2p - C2)).reshape(1, C2p)

    out_dtype = x.dtype

    # VMEM working set (double-buffered blocks + f32 accumulator); only raise
    # the scoped limit when the 32 MiB default would not fit (keeps v7x-safe).
    vmem_bytes = (2 * tm * tk * 2            # patches tiles (bf16, double-buffered)
                  + 2 * tk * C2p * 2         # weight tiles  (bf16)
                  + 2 * C2p * 4              # bias
                  + 2 * tm * C2p * jnp.dtype(out_dtype).itemsize   # output tiles
                  + tm * C2p * 4)            # f32 accumulator scratch
    vmem_limit = None
    if vmem_bytes > 32 * 1024 * 1024:
        vmem_limit = min(int(vmem_bytes * 1.25), 60 * 1024 * 1024)

    out = pl.pallas_call(
        _conv_bn_silu_kernel,
        out_shape=jax.ShapeDtypeStruct((M_pad, C2p), out_dtype),
        grid_spec=pltpu.PrefetchScalarGridSpec(
            num_scalar_prefetch=0,
            grid=(M_pad // tm, Kp // tk),
            in_specs=[
                pl.BlockSpec((tm, tk), lambda i, kt: (i, kt)),    # patches tile
                pl.BlockSpec((tk, C2p), lambda i, kt: (kt, 0)),   # BN-scaled weight
                pl.BlockSpec((1, C2p), lambda i, kt: (0, 0)),     # BN bias
            ],
            out_specs=pl.BlockSpec((tm, C2p), lambda i, kt: (i, 0)),
            scratch_shapes=[pltpu.VMEM((tm, C2p), jnp.float32)],
        ),
        compiler_params=pltpu.CompilerParams(
            dimension_semantics=("parallel", "arbitrary"),
            vmem_limit_bytes=vmem_limit),
    )(patches, w_mat, bias)

    out = out[:M, :C2].reshape(N, H_out, W_out, C2)
    if data_format == "NHWC":
        return out
    return out.transpose(0, 3, 1, 2)   # NCHW, matching the PyTorch module


def _reference(x, weight, gamma, beta, running_mean, running_var, *, stride, padding, eps):
    p = autopad(weight.shape[-1], padding)
    y = lax.conv_general_dilated(
        x, weight, window_strides=(stride, stride),
        padding=[(p, p), (p, p)],
        dimension_numbers=("NCHW", "OIHW", "NCHW"))
    rm = running_mean[None, :, None, None]
    rv = running_var[None, :, None, None]
    g = gamma[None, :, None, None]
    b = beta[None, :, None, None]
    y = (y - rm) / jnp.sqrt(rv + eps) * g + b
    return y * jax.nn.sigmoid(y)


if __name__ == "__main__":
    key = jax.random.PRNGKey(0)
    kx, kw = jax.random.split(key)

    # Conv(c1=4, c2=8, k=3, s=1) on a (2, 4, 16, 16) NCHW input.
    N, C1, H, W = 2, 4, 16, 16
    C2, k, s = 8, 3, 1

    x = jax.random.normal(kx, (N, C1, H, W), dtype=jnp.float32)
    weight = jax.random.normal(kw, (C2, C1, k, k), dtype=jnp.float32) * 0.1

    # Deterministic BatchNorm parameters / running stats (eval-mode semantics).
    gamma = 1.0 + 0.02 * jnp.arange(C2, dtype=jnp.float32)
    beta = 0.01 * jnp.arange(C2, dtype=jnp.float32)
    running_mean = 0.1 * jnp.arange(C2, dtype=jnp.float32)
    running_var = 1.0 + 0.05 * jnp.arange(C2, dtype=jnp.float32)

    out = conv_bn_silu(x, weight, gamma, beta, running_mean, running_var,
                       stride=s, padding=None, eps=1e-3)
    out = jax.block_until_ready(out)

    ref = _reference(x, weight, gamma, beta, running_mean, running_var,
                     stride=s, padding=None, eps=1e-3)
    assert out.shape == (N, C2, H, W)
    # bf16 MXU inputs (f32 accumulation) -> tolerance widened vs. pure-f32 ref.
    assert jnp.allclose(out, ref, atol=3e-2, rtol=3e-2), \
        f"max err {jnp.max(jnp.abs(out - ref))}"

    print("KERNEL_OK")
</pallas_src>

<mosaic_0001>
module attributes {stable_mosaic.version = 11 : i64} {
  func.func @_conv_bn_silu_kernel(%arg0: i32, %arg1: i32, %arg2: memref<256x128xbf16, #tpu.memory_space<vmem>>, %arg3: memref<128x128xbf16, #tpu.memory_space<vmem>>, %arg4: memref<1x128xf32, #tpu.memory_space<vmem>>, %arg5: memref<256x128xf32, #tpu.memory_space<vmem>>, %arg6: memref<256x128xf32, #tpu.memory_space<vmem>>) attributes {dimension_semantics = [#tpu.dimension_semantics<parallel>, #tpu.dimension_semantics<arbitrary>], iteration_bounds = array<i64: 2, 1>, scalar_prefetch = 0 : i64, scratch_operands = 1 : i64, tpu.core_type = #tpu.core_type<tc>, window_params = [{transform_indices = @transform_0, window_bounds = array<i64: 256, 128>}, {transform_indices = @transform_1, window_bounds = array<i64: 128, 128>}, {pipeline_mode = #tpu.pipeline_mode<synchronous>, transform_indices = @transform_2, window_bounds = array<i64: 1, 128>}, {transform_indices = @transform_3, window_bounds = array<i64: 256, 128>}]} {
    %c0_i32 = arith.constant 0 : i32
    %0 = arith.cmpi eq, %arg1, %c0_i32 : i32
    %1 = arith.extui %0 : i1 to i32
    %c0_i32_0 = arith.constant 0 : i32
    %2 = arith.cmpi ne, %1, %c0_i32_0 : i32
    scf.if %2 {
      %cst_10 = arith.constant 0.000000e+00 : f32
      %12 = vector.broadcast %cst_10 : f32 to vector<256x128xf32>
      %c0_11 = arith.constant 0 : index
      %c0_12 = arith.constant 0 : index
      %13 = vector.load %arg6[%c0_11, %c0_12] : memref<256x128xf32, #tpu.memory_space<vmem>>, vector<256x128xf32>
      tpu.vector_store %arg6[%c0_11, %c0_12], %12 {strides = array<i32>} : memref<256x128xf32, #tpu.memory_space<vmem>>, vector<256x128xf32>,
    } else {
    }
    %c0 = arith.constant 0 : index
    %c0_1 = arith.constant 0 : index
    %3 = vector.load %arg6[%c0, %c0_1] : memref<256x128xf32, #tpu.memory_space<vmem>>, vector<256x128xf32>
    %c0_2 = arith.constant 0 : index
    %c0_3 = arith.constant 0 : index
    %4 = vector.load %arg2[%c0_2, %c0_3] : memref<256x128xbf16, #tpu.memory_space<vmem>>, vector<256x128xbf16>
    %c0_4 = arith.constant 0 : index
    %c0_5 = arith.constant 0 : index
    %5 = vector.load %arg3[%c0_4, %c0_5] : memref<128x128xbf16, #tpu.memory_space<vmem>>, vector<128x128xbf16>
    %cst = arith.constant dense<0.000000e+00> : vector<256x128xf32>
    %6 = tpu.matmul %4, %5, %cst {dimension_numbers = #tpu.dot_dimension_numbers<[1], [0], [0], [1], [0, 0, 1, 1], [], []>} : vector<256x128xbf16>, vector<128x128xbf16>, vector<256x128xf32> -> vector<256x128xf32>
    %7 = arith.addf %3, %6 : vector<256x128xf32>
    %c0_6 = arith.constant 0 : index
    %c0_7 = arith.constant 0 : index
    %8 = vector.load %arg6[%c0_6, %c0_7] : memref<256x128xf32, #tpu.memory_space<vmem>>, vector<256x128xf32>
    tpu.vector_store %arg6[%c0_6, %c0_7], %7 {strides = array<i32>} : memref<256x128xf32, #tpu.memory_space<vmem>>, vector<256x128xf32>,
    %c0_i32_8 = arith.constant 0 : i32
    %9 = arith.cmpi eq, %arg1, %c0_i32_8 : i32
    %10 = arith.extui %9 : i1 to i32
    %c0_i32_9 = arith.constant 0 : i32
    %11 = arith.cmpi ne, %10, %c0_i32_9 : i32
    scf.if %11 {
      %c0_10 = arith.constant 0 : index
      %c0_11 = arith.constant 0 : index
      %12 = vector.load %arg6[%c0_10, %c0_11] : memref<256x128xf32, #tpu.memory_space<vmem>>, vector<256x128xf32>
      %c0_12 = arith.constant 0 : index
      %c0_13 = arith.constant 0 : index
      %13 = vector.load %arg4[%c0_12, %c0_13] : memref<1x128xf32, #tpu.memory_space<vmem>>, vector<1x128xf32>
      %14 = vector.broadcast %13 : vector<1x128xf32> to vector<256x128xf32>
      %15 = arith.addf %12, %14 : vector<256x128xf32>
      %16 = arith.negf %15 : vector<256x128xf32>
      %17 = math.exp %16 : vector<256x128xf32>
      %cst_14 = arith.constant 1.000000e+00 : f32
      %18 = vector.broadcast %cst_14 : f32 to vector<256x128xf32>
      %19 = arith.addf %18, %17 : vector<256x128xf32>
      %20 = arith.divf %18, %19 : vector<256x128xf32>
      %21 = arith.mulf %15, %20 : vector<256x128xf32>
      %c0_15 = arith.constant 0 : index
      %c0_16 = arith.constant 0 : index
      %22 = vector.load %arg5[%c0_15, %c0_16] : memref<256x128xf32, #tpu.memory_space<vmem>>, vector<256x128xf32>
      tpu.vector_store %arg5[%c0_15, %c0_16], %21 {strides = array<i32>} : memref<256x128xf32, #tpu.memory_space<vmem>>, vector<256x128xf32>,
    } else {
    }
    return
  }
  func.func @transform_0(%arg0: i32, %arg1: i32) -> (i32, i32) {
    %c0_i32 = arith.constant 0 : i32
    return %arg0, %arg1 : i32, i32
  }
  func.func @transform_1(%arg0: i32, %arg1: i32) -> (i32, i32) {
    %c0_i32 = arith.constant 0 : i32
    %c0_i32_0 = arith.constant 0 : i32
    return %arg1, %c0_i32 : i32, i32
  }
  func.func @transform_2(%arg0: i32, %arg1: i32) -> (i32, i32) {
    %c0_i32 = arith.constant 0 : i32
    %c0_i32_0 = arith.constant 0 : i32
    %c0_i32_1 = arith.constant 0 : i32
    return %c0_i32, %c0_i32_0 : i32, i32
  }
  func.func @transform_3(%arg0: i32, %arg1: i32) -> (i32, i32) {
    %c0_i32 = arith.constant 0 : i32
    %c0_i32_0 = arith.constant 0 : i32
    return %arg0, %c0_i32 : i32, i32
  }
}

</mosaic_0001>

<bundles_post_ra>
// kernel: tpu_custom_call.1
= control target key start
LH: loop header
LB: loop body
LE: loop exit
PB: predicated region body
PF: predicated region fallthrough
CT: control target
= control target key end

     0   :  { %8 = vsyncpa [#allocation4], 0  ;;  %s2194_s0 = inlined_call_operand.hbm [shape: bf16[512,128], index: 0, kind: input, shape index: {}]   ;;  %s2195_s1 = inlined_call_operand.hbm [shape: bf16[128,128], index: 1, kind: input, shape index: {}]   ;;  %s2196_s2 = inlined_call_operand.vmem [shape: f32[1,128], index: 2, kind: input, shape index: {}]   ;;  %s2197_s3 = inlined_call_operand.hbm [shape: f32[512,128], index: 3, kind: output, shape index: {}]  }
   0x1   :  { %10 = vsyncpa [#allocation4 + $0x1], 0 }
   0x2   :  { %11 = vsyncpa [#allocation7], 0 }
   0x3   :  { %12 = vsyncpa [#allocation5], 0 }
   0x4   :  { %14 = vsyncpa [#allocation5 + $0x1], 0  ;;  %s1721_s12 = smov 0   ;;  %s1723_s13 = smov 0  }
   0x5   :  { %s1725_s14 = smov 0   ;;  %s1727_s15 = smov 0  }
   0x6   :  { %s1729_s16 = smov 0   ;;  %s1731_s17 = smov 0  }
   0x7 LB: > { %s1155_s18 = sadd.s32 4294967295, %s1692_s17   ;;  %s1156_s19 = sadd.s32 4294967294, %s1692_s17   ;;  %s1692_s17 = sphi %s1731_s17, %s20_s17   ;;  %s1688_s16 = sphi %s1729_s16, %s2221_s16   ;;  %s1684_s15 = sphi %s1727_s15, %s2220_s15   ;;  %s1680_s14 = sphi %s1725_s14, %s2219_s14   ;;  %s1676_s13 = sphi %s1723_s13, %s2218_s13   ;;  %s1672_s12 = sphi %s1721_s12, %s2217_s12  }
   0x8   : > { %p54_p0 = scmp.ne.s32.totalorder %s1676_s13, %s1672_s12  ;;  %p1755_p1 = scmp.eq.s32.totalorder %s1155_s18, 0 }
   0x9   : > { %p1759_p2 = scmp.eq.s32.totalorder %s1155_s18, 1  ;;  %p131_p3 = scmp.eq.s32.totalorder %s1156_s19, 1 }
   0xa   : > { %s2202_s20 = scalar_select %p1755_p1, 1, 0 }
   0xb   : > { %s2203_s21 = scalar_select %p1759_p2, 1, 0 }
   0xc   : > { %p1765_p4 = por %p1755_p1, %p54_p0  ;;  %p1157_p5 = scmp.ge.s32.totalorder %s1692_s17, 1 }
   0xd   : > { %p1770_p6 = por %p131_p3, %p54_p0  ;;  %p138_p7 = scmp.lt.s32.totalorder %s1692_s17, 3 }
   0xe   : > { %s2204_s22 = scalar_select %p1765_p4, 1, 0 }
   0xf   : > { %s2205_s23 = scalar_select %p1770_p6, 1, 0 }
  0x10   : > { %p1775_p8 = pnand %p1157_p5, %p138_p7  ;;  %s1694_s25 = smov [#allocation6]  }
  0x11   : > { %s153_s26 = sshll.u32 %s1694_s25, 4  ;;  %s32_s28 = sadd.s32 1, %s1688_s16  ;;  %s154_s26 = int_to_ptr.vmem [resolvable:$true] %s153_s26 }
  0x12   : > { %s2206_s24 = scalar_select %p1775_p8, 1, 0 }
  0x13   : > { %p1327_p9 = pneg %p1775_p8  ;;  %s1548_s4 = scalar_lea.hbm %s2195_s1, 1024 }
  0x14   : > { %p1549_p12 = scmp.ne.s32.totalorder %s2195_s1, %s1548_s4  ;;  %p1555_p5 = scmp.lt.u32.totalorder %s1548_s4, %s2195_s1 }
  0x15   : > { %p1784_p11 = pnand %p1327_p9, %p1755_p1 }
  0x17   : > { %p1550_p13 = pneg %p1784_p11 }
  0x19   : > { %p1551_p0 = pnand %p1550_p13, %p1549_p12 }
  0x1b   : > { %p1552_p3 = pneg %p1551_p0 }
  0x1d   : > { %p1557_p7 = pnand %p1555_p5, %p1552_p3 }
  0x1f   : > { %1560 = shalt.err (!%p1557_p7)
}
  0x20   : > { %s1561_s9 = scalar_lea.vmem %s154_s26, 1024  ;;  %p1569_p1 = scmp.lt.s32.totalorder %s154_s26, %s154_s26 }
  0x21   : > { %p1562_p9 = scmp.ne.s32.totalorder %s154_s26, %s1561_s9  ;;  %p1570_p4 = scmp.lt.s32.totalorder %s1561_s9, %s1561_s9 }
  0x23   : > { %p1564_p10 = pnand %p1562_p9, %p1550_p13  ;;  %p1571_p8 = por %p1570_p4, %p1569_p1 }
  0x25   : > { %p1565_p6 = pneg %p1564_p10 }
  0x27   : > { %p1572_p2 = pnand %p1571_p8, %p1565_p6 }
  0x29   : > { %1575 = shalt.err (!%p1572_p2)
}
  0x2a   : > { %s1695_s10 = smov 64   ;;  %s1696_s11 = smov 4  }
  0x2b   : > { %1330 = dma.hbm_to_vmem [thread:$0]  (!%p1784_p11), %s2195_s1, 1024, %s154_s26, [#allocation7], %s1695_s10, %s1695_s10, %s1696_s11  }
  0x2c   : > { %p34_p1 = scmp.ge.s32.totalorder %s32_s28, 2  ;;  %s41_s25 = sadd.s32 1, %s1680_s14 }
  0x2d   : > { %p48_p2 = scmp.ne.s32.totalorder %s1680_s14, %s1676_s13  ;;  %p49_p4 = scmp.eq.s32.totalorder %s1692_s17, 0 }
  0x2e   : > { %s2223_s28 = smov (%p34_p1, %s32_s28), 0  ;;  %p2209_p8 = scmp.ne.s32.totalorder %s2203_s21, 0 }
  0x2f   : > { %p1814_p6 = por %p49_p4, %p48_p2  ;;  %s36_s30 = ssub.s32 %s1688_s16, %s2223_s28 }
  0x30   : > { %p1820_p10 = por %p2209_p8, %p48_p2  ;;  %p1340_p12 = scmp.lt.s32.totalorder %s1692_s17, 2 }
  0x31   : > { %p39_p11 = scmp.eq.s32.totalorder %s36_s30, 0  ;;  %s170_s26 = sand.u32 1, %s1680_s14  }
  0x32   : > { %s1160_s4 = sshll.u32 %s170_s26, 7  ;;  %s1229_s6 = sshll.u32 %s1688_s16, 11 }
  0x33   : > { %s1829_s5 = scalar_select %p39_p11, %s1680_s14, %s41_s25  }
  0x34   : > { %s1835_s9 = scalar_lea.hbm %s2194_s0, %s1229_s6  ;;  %s174_s21 = scalar_lea.vmem [#allocation3], %s1160_s4 }
  0x35   : > { %s182_s18 = sshll.u32 %s174_s21, 4  ;;  %p1841_p13 = pnand %p1340_p12, %p1814_p6  ;;  %s1837_s18 = int_to_ptr.vmem [resolvable:$true] %s182_s18 }
  0x36   : > { %s1845_s25 = scalar_lea.sflag [#allocation4], %s170_s26  ;;  %s1576_s30 = scalar_lea.hbm %s1835_s9, 2048 }
  0x37   : > { %p1577_p0 = scmp.ne.s32.totalorder %s1835_s9, %s1576_s30  ;;  %p1578_p3 = pneg %p1841_p13 }
  0x38   : > { %s1581_s29 = scalar_lea.hbm %s2194_s0, 4096  ;;  %p1582_p9 = scmp.lt.u32.totalorder %s1835_s9, %s2194_s0 }
  0x39   : > { %p1579_p5 = pnand %p1578_p3, %p1577_p0  ;;  %p1583_p1 = scmp.lt.u32.totalorder %s1581_s29, %s1576_s30 }
  0x3a   : > { %p1585_p4 = scmp.lt.u32.totalorder %s1576_s30, %s1835_s9 }
  0x3b   : > { %p1580_p7 = pneg %p1579_p5  ;;  %p1584_p2 = por %p1583_p1, %p1582_p9 }
  0x3d   : > { %p1586_p6 = por %p1585_p4, %p1584_p2 }
  0x3f   : > { %p1587_p8 = pnand %p1586_p6, %p1580_p7 }
  0x41   : > { %1590 = shalt.err (!%p1587_p8)
}
  0x42   : > { %s1591_s26 = scalar_lea.vmem %s1837_s18, 2048  ;;  %s1697_s21 = smov [#allocation3]  }
  0x43   : > { %p1592_p12 = scmp.ne.s32.totalorder %s1837_s18, %s1591_s26  ;;  %s1596_s4 = sshll.u32 %s1697_s21, 4  ;;  %s1597_s4 = int_to_ptr.vmem [resolvable:$false] %s1596_s4 }
  0x44   : > { %s1598_s6 = scalar_lea.vmem %s1597_s4, 4096  ;;  %p1599_p5 = scmp.lt.s32.totalorder %s1837_s18, %s1597_s4 }
  0x45   : > { %p1594_p11 = pnand %p1592_p12, %p1578_p3  ;;  %p1600_p9 = scmp.lt.s32.totalorder %s1598_s6, %s1591_s26 }
  0x47   : > { %p1595_p0 = pneg %p1594_p11  ;;  %p1601_p1 = por %p1600_p9, %p1599_p5 }
  0x49   : > { %p1602_p2 = pnand %p1601_p1, %p1595_p0 }
  0x4b   : > { %1605 = shalt.err (!%p1602_p2)
}
  0x4c   : > { %1334 = dma.hbm_to_vmem [thread:$0]  (!%p1841_p13), %s1835_s9, 2048, %s1837_s18, %s1845_s25, %s1695_s10, %s1695_s10, %s1696_s11  }
  0x4d   : > { %p2212_p3 = scmp.ne.s32.totalorder %s2206_s24, 0 }
  0x4e   : > { %s1879_s30 = sand.u32 (!%p2212_p3), 1, %s1676_s13   ;;  %p2213_p7 = scmp.ne.s32.totalorder (!%p2212_p3), %s2204_s22, 0 }
  0x4f   : > { %194 = sbr.rel (%p2212_p3) target bundleno = 439 (0x1b7), region = 32  ;;  %s1164_s29 = sshll.u32 (!%p2212_p3), %s1879_s30, 7 }
  0x50   : > { %s197_s7 = scalar_lea.sflag (!%p2212_p3), [#allocation4], %s1879_s30  ;;  %s1883_s8 = scalar_lea.vmem (!%p2212_p3), [#allocation3], %s1164_s29 }
  0x56   : > { %1659 = dma.done.wait (%p2213_p7), %s197_s7, 2048  }
  0x57   : > { %1661 = vsyncadd (%p2213_p7), %s197_s7, 4294965248  ;;  %p2214_p13 = scmp.ne.s32.totalorder %s2202_s20, 0 }
  0x59   : > { %1663 = dma.done.wait (%p2214_p13), [#allocation7], 1024  }
  0x5a   : > { %1665 = vsyncadd (%p2214_p13), [#allocation7], 4294966272  ;;  %v1396_v0 = vld [vmem:[#allocation6] sm:$0xff]   ;;  %v1397_v1 = vld [vmem:[#allocation6 + $0x8] sm:$0xff]   ;;  %s1166_s24 = sshll.u32 %s1879_s30, 8  ;;  %s1230_s11 = sshll.u32 %s1684_s15, 12 }
  0x5b   : > { %1255 = vmatprep.subr.bf16.mxu0 %v1396_v0  ;;  %1303 = vmatprep.subr.bf16.mxu1 %v1396_v0  ;;  %v1398_v2 = vld [vmem:[#allocation6 + $0x10] sm:$0xff]   ;;  %v1399_v3 = vld [vmem:[#allocation6 + $0x18] sm:$0xff]   ;;  %v1404_v4 = vld [vmem:[%s1883_s8] sm:$0xff]   ;;  %s2017_s10 = scalar_lea.vmem [#allocation8], %s1166_s24  ;;  %s2139_s15 = scalar_lea.hbm %s2197_s3, %s1230_s11 }
  0x5c   : > { %1256 = vmatpush3.bf16.msra.mxu0 %v1396_v0  ;;  %1311 = vmatpush3.bf16.msra.mxu1 %v1396_v0  ;;  %v1405_v5 = vld [vmem:[%s1883_s8 + $0x40] sm:$0xff]   ;;  %v1401_v7 = vld [vmem:[#allocation6 + $0x28] sm:$0xff]   ;;  %v1402_v8 = vld [vmem:[#allocation6 + $0x30] sm:$0xff]   ;;  %s1060_s9 = sshll.u32 %s2017_s10, 4  ;;  %s1047_s25 = scalar_lea.sflag [#allocation5], %s1879_s30  ;;  %s2141_s9 = int_to_ptr.vmem [resolvable:$true] %s1060_s9 }
  0x5d   : > { %1257 = vmatprep.subr.bf16.mxu0 %v1397_v1  ;;  %1304 = vmatprep.subr.bf16.mxu1 %v1397_v1  ;;  %v1400_v6 = vld [vmem:[#allocation6 + $0x20] sm:$0xff]   ;;  %v1403_v9 = vld [vmem:[#allocation6 + $0x38] sm:$0xff]   ;;  %v1406_v10 = vld [vmem:[%s1883_s8 + $0x8] sm:$0xff]   ;;  %s1606_s26 = scalar_lea.vmem %s2141_s9, 4096  ;;  %s1698_s21 = smov [#allocation8]  }
  0x5e   : > { %1271 = vmatprep.mubr.bf16.mxu0 %v1404_v4  ;;  %1287 = vmatprep.mubr.bf16.mxu1 %v1405_v5  ;;  %v1407_v11 = vld [vmem:[%s1883_s8 + $0x48] sm:$0xff]   ;;  %v1408_v12 = vld [vmem:[%s1883_s8 + $0x10] sm:$0xff]   ;;  %v1410_v14 = vld [vmem:[%s1883_s8 + $0x18] sm:$0xff]   ;;  %p1607_p4 = scmp.ne.s32.totalorder %s2141_s9, %s1606_s26  ;;  %s1610_s4 = sshll.u32 %s1698_s21, 4  ;;  %s1611_s4 = int_to_ptr.vmem [resolvable:$false] %s1610_s4 }
  0x5f   : > { %v1409_v13 = vld [vmem:[%s1883_s8 + $0x50] sm:$0xff]   ;;  %v1411_v15 = vld [vmem:[%s1883_s8 + $0x58] sm:$0xff]   ;;  %v1412_v16 = vld [vmem:[%s1883_s8 + $0x20] sm:$0xff]   ;;  %s1612_s6 = scalar_lea.vmem %s1611_s4, 8192  ;;  %p1613_p12 = scmp.lt.s32.totalorder %s2141_s9, %s1611_s4 }
  0x60   : > { %1258 = vmatpush3.bf16.msra.mxu0 %v1397_v1  ;;  %1312 = vmatpush3.bf16.msra.mxu1 %v1397_v1  ;;  %v1413_v17 = vld [vmem:[%s1883_s8 + $0x60] sm:$0xff]   ;;  %v1414_v18 = vld [vmem:[%s1883_s8 + $0x28] sm:$0xff]   ;;  %v1416_v20 = vld [vmem:[%s1883_s8 + $0x30] sm:$0xff]   ;;  %p1608_p6 = pnand %p1607_p4, %p1820_p10  ;;  %p1614_p11 = scmp.lt.s32.totalorder %s1612_s6, %s1606_s26 }
  0x61   : > { %1259 = vmatprep.subr.bf16.mxu0 %v1398_v2  ;;  %1305 = vmatprep.subr.bf16.mxu1 %v1398_v2  ;;  %v1415_v19 = vld [vmem:[%s1883_s8 + $0x68] sm:$0xff]   ;;  %v1417_v21 = vld [vmem:[%s1883_s8 + $0x70] sm:$0xff]   ;;  %v1418_v22 = vld [vmem:[%s1883_s8 + $0x38] sm:$0xff]  }
  0x62   : > { %v1419_v23 = vld [vmem:[%s1883_s8 + $0x78] sm:$0xff]   ;;  %v1912_v24 = vld [vmem:[%s2196_s2] ss:$0 sm:$0xff]  ;;  %p1609_p8 = pneg %p1608_p6  ;;  %p1615_p0 = por %p1614_p11, %p1613_p12 }
  0x64   : > { %1260 = vmatpush3.bf16.msra.mxu0 %v1398_v2  ;;  %1313 = vmatpush3.bf16.msra.mxu1 %v1398_v2  ;;  %p1616_p5 = pnand %p1615_p0, %p1609_p8 }
  0x65   : > { %1261 = vmatprep.subr.bf16.mxu0 %v1399_v3  ;;  %1306 = vmatprep.subr.bf16.mxu1 %v1399_v3 }
  0x68   : > { %1262 = vmatpush3.bf16.msra.mxu0 %v1399_v3  ;;  %1314 = vmatpush3.bf16.msra.mxu1 %v1399_v3 }
  0x69   : > { %1263 = vmatprep.subr.bf16.mxu0 %v1400_v6  ;;  %1307 = vmatprep.subr.bf16.mxu1 %v1400_v6 }
  0x6c   : > { %1264 = vmatpush3.bf16.msra.mxu0 %v1400_v6  ;;  %1315 = vmatpush3.bf16.msra.mxu1 %v1400_v6 }
  0x6d   : > { %1265 = vmatprep.subr.bf16.mxu0 %v1401_v7  ;;  %1308 = vmatprep.subr.bf16.mxu1 %v1401_v7 }
  0x70   : > { %1266 = vmatpush3.bf16.msra.mxu0 %v1401_v7  ;;  %1316 = vmatpush3.bf16.msra.mxu1 %v1401_v7 }
  0x71   : > { %1267 = vmatprep.subr.bf16.mxu0 %v1402_v8  ;;  %1309 = vmatprep.subr.bf16.mxu1 %v1402_v8 }
  0x74   : > { %1268 = vmatpush3.bf16.msra.mxu0 %v1402_v8  ;;  %1317 = vmatpush3.bf16.msra.mxu1 %v1402_v8 }
  0x75   : > { %1269 = vmatprep.subr.bf16.mxu0 %v1403_v9  ;;  %1310 = vmatprep.subr.bf16.mxu1 %v1403_v9 }
  0x78   : > { %1270 = vmatpush3.bf16.msra.mxu0 %v1403_v9  ;;  %1318 = vmatpush3.bf16.msra.mxu1 %v1403_v9 }
  0x7b   : > { %1272 = vmatmul.mubr.bf16.vlgmr.msra.gmra.mrb[0].mxu0 %v1406_v10  ;;  %1288 = vmatmul.mubr.bf16.vlgmr.msra.gmra.mrb[0].mxu1 %v1407_v11 }
  0x7c   : > { %1275 = vmatprep.mubr.bf16.mxu0 %v1408_v12  ;;  %1291 = vmatprep.mubr.bf16.mxu1 %v1409_v13 }
  0x83   : > { %1276 = vmatmul.mubr.bf16.gmra.mrb[4].mxu0 %v1410_v14  ;;  %1292 = vmatmul.mubr.bf16.gmra.mrb[4].mxu1 %v1411_v15 }
  0x84   : > { %1279 = vmatprep.mubr.bf16.mxu0 %v1412_v16  ;;  %1295 = vmatprep.mubr.bf16.mxu1 %v1413_v17 }
  0x8b   : > { %1280 = vmatmul.mubr.bf16.gmra.mrb[8].mxu0 %v1414_v18  ;;  %1296 = vmatmul.mubr.bf16.gmra.mrb[8].mxu1 %v1415_v19 }
  0x8c   : > { %1283 = vmatprep.mubr.bf16.mxu0 %v1416_v20  ;;  %1299 = vmatprep.mubr.bf16.mxu1 %v1417_v21 }
  0x93   : > { %1284 = vmatmul.mubr.bf16.gmra.mrb[12].mxu0 %v1418_v22  ;;  %1300 = vmatmul.mubr.bf16.gmra.mrb[12].mxu1 %v1419_v23 }
 0x14e   : > { %v1273_v25 = vpop.f32.mrb[0].mxu0  ;;  %v1289_v26 = vpop.f32.mrb[0].mxu1 }
 0x14f   : > { %v1915_v27 = vadd.f32 %v1273_v25, %v1912_v24  ;;  %v1918_v28 = vadd.f32 %v1289_v26, %v1912_v24  ;;  %v525_v29 = vpop.f32.mrb[1].mxu0  ;;  %v589_v30 = vpop.f32.mrb[1].mxu1 }
 0x150   : > { %v1921_v31 = vadd.f32 %v1912_v24, %v525_v29  ;;  %v1924_v32 = vadd.f32 %v1912_v24, %v589_v30  ;;  %v1274_v33 = vpop.f32.mrb[2].mxu0  ;;  %v1290_v34 = vpop.f32.mrb[2].mxu1 }
 0x151   : > { %v1194_v35 = vmul.f32 -1.442695, %v1915_v27  ;;  %v1210_v36 = vmul.f32 -1.442695, %v1918_v28  ;;  %v1929_v37 = vadd.f32 %v1274_v33, %v1912_v24  ;;  %v1932_v38 = vadd.f32 %v1290_v34, %v1912_v24  ;;  %v528_v39 = vpop.f32.mrb[3].mxu0  ;;  %v592_v40 = vpop.f32.mrb[3].mxu1 }
 0x152   : > { %v1192_v41 = vmul.f32 -1.442695, %v1921_v31  ;;  %v1208_v42 = vmul.f32 -1.442695, %v1924_v32  ;;  %v1937_v43 = vadd.f32 %v1912_v24, %v528_v39  ;;  %v1940_v44 = vadd.f32 %v1912_v24, %v592_v40 }
 0x153   : > { %1420 = vpow2.f32 %v1194_v35  ;;  %v1195_v45 = vmul.f32 -1.442695, %v1929_v37  ;;  %v1211_v46 = vmul.f32 -1.442695, %v1932_v38 }
 0x154   : > { %1422 = vpow2.f32 %v1210_v36  ;;  %v1193_v47 = vmul.f32 -1.442695, %v1937_v43  ;;  %v1209_v48 = vmul.f32 -1.442695, %v1940_v44 }
 0x155   : > { %1424 = vpow2.f32 %v1192_v41 }
 0x156   : > { %1426 = vpow2.f32 %v1208_v42  ;;  %v1277_v49 = vpop.f32.mrb[4].mxu0  ;;  %v1293_v50 = vpop.f32.mrb[4].mxu1 }
 0x157   : > { %1428 = vpow2.f32 %v1195_v45  ;;  %v1947_v51 = vadd.f32 %v1277_v49, %v1912_v24  ;;  %v1950_v52 = vadd.f32 %v1293_v50, %v1912_v24  ;;  %v541_v53 = vpop.f32.mrb[5].mxu0  ;;  %v605_v54 = vpop.f32.mrb[5].mxu1 }
 0x158   : > { %1430 = vpow2.f32 %v1211_v46  ;;  %v1953_v55 = vadd.f32 %v1912_v24, %v541_v53  ;;  %v1956_v56 = vadd.f32 %v1912_v24, %v605_v54  ;;  %v1278_v57 = vpop.f32.mrb[6].mxu0  ;;  %v1294_v58 = vpop.f32.mrb[6].mxu1 }
 0x159   : > { %1432 = vpow2.f32 %v1193_v47  ;;  %v1198_v59 = vmul.f32 -1.442695, %v1947_v51  ;;  %v1214_v60 = vmul.f32 -1.442695, %v1950_v52  ;;  %v1961_v61 = vadd.f32 %v1278_v57, %v1912_v24  ;;  %v544_v62 = vpop.f32.mrb[7].mxu0  ;;  %v608_v63 = vpop.f32.mrb[7].mxu1 }
 0x15a   : > { %1434 = vpow2.f32 %v1209_v48  ;;  %v1196_v0 = vmul.f32 -1.442695, %v1953_v55  ;;  %v1212_v1 = vmul.f32 -1.442695, %v1956_v56  ;;  %v1973_v33 = vadd.f32 %v1294_v58, %v1912_v24 }
 0x15b   : > { %1436 = vpow2.f32 %v1198_v59  ;;  %v1199_v2 = vmul.f32 -1.442695, %v1961_v61  ;;  %v1976_v36 = vadd.f32 %v1912_v24, %v544_v62  ;;  %v1980_v42 = vadd.f32 %v1912_v24, %v608_v63 }
 0x15c   : > { %1438 = vpow2.f32 %v1214_v60  ;;  %v1215_v58 = vmul.f32 -1.442695, %v1973_v33 }
 0x15d   : > { %v1421_v3 = vpop.eup %1420  ;;  %1440 = vpow2.f32 %v1196_v0 }
 0x15e   : > { %v1423_v4 = vpop.eup %1422  ;;  %v888_v5 = vadd.f32 1.0, %v1421_v3  ;;  %1442 = vpow2.f32 %v1212_v1  ;;  %v1281_v6 = vpop.f32.mrb[8].mxu0  ;;  %v1197_v1 = vmul.f32 -1.442695, %v1976_v36 }
 0x15f   : > { %v1297_v7 = vpop.f32.mrb[8].mxu1  ;;  %v1425_v8 = vpop.eup %1424  ;;  %v904_v9 = vadd.f32 1.0, %v1423_v4  ;;  %1444 = vpow2.f32 %v1199_v2  ;;  %v1985_v49 = vadd.f32 %v1281_v6, %v1912_v24  ;;  %v1213_v6 = vmul.f32 -1.442695, %v1980_v42 }
 0x160   : > { %v557_v10 = vpop.f32.mrb[9].mxu0  ;;  %v621_v11 = vpop.f32.mrb[9].mxu1  ;;  %1446 = vrcp.f32 %v888_v5  ;;  %v886_v13 = vadd.f32 1.0, %v1425_v8  ;;  %v1993_v59 = vadd.f32 %v1297_v7, %v1912_v24 }
 0x161   : > { %v1427_v12 = vpop.eup %1426  ;;  %v1282_v14 = vpop.f32.mrb[10].mxu0  ;;  %1448 = vrcp.f32 %v904_v9  ;;  %v2001_v2 = vadd.f32 %v1912_v24, %v557_v10  ;;  %v2008_v7 = vadd.f32 %v1912_v24, %v621_v11 }
 0x162   : > { %v1966_v15 = vpop.f32.mrb[10].mxu1  ;;  %v1429_v16 = vpop.eup %1428  ;;  %v902_v17 = vadd.f32 1.0, %v1427_v12  ;;  %1450 = vrcp.f32 %v886_v13  ;;  %v1202_v12 = vmul.f32 -1.442695, %v1985_v49  ;;  %v2013_v10 = vadd.f32 %v1282_v14, %v1912_v24 }
 0x163   : > { %v1968_v18 = vpop.f32.mrb[11].mxu0  ;;  %v1431_v19 = vpop.eup %1430  ;;  %v889_v20 = vadd.f32 1.0, %v1429_v16  ;;  %v2024_v11 = vadd.f32 %v1966_v15, %v1912_v24  ;;  %v1216_v15 = vmul.f32 -1.442695, %v2008_v7 }
 0x164   : > { %v1970_v21 = vpop.f32.mrb[11].mxu1  ;;  %v1433_v22 = vpop.eup %1432  ;;  %1452 = vrcp.f32 %v902_v17  ;;  %v905_v23 = vadd.f32 1.0, %v1431_v19  ;;  %v1200_v17 = vmul.f32 -1.442695, %v2001_v2  ;;  %v2031_v19 = vadd.f32 %v1912_v24, %v1968_v18 }
 0x165   : > { %v1435_v25 = vpop.eup %1434  ;;  %1454 = vrcp.f32 %v889_v20  ;;  %v887_v26 = vadd.f32 1.0, %v1433_v22  ;;  %v2038_v22 = vadd.f32 %v1912_v24, %v1970_v21  ;;  %v1203_v18 = vmul.f32 -1.442695, %v2013_v10 }
 0x166   : > { %v1437_v29 = vpop.eup %1436  ;;  %1456 = vrcp.f32 %v905_v23  ;;  %v903_v30 = vadd.f32 1.0, %v1435_v25  ;;  %v1285_v39 = vpop.f32.mrb[12].mxu0  ;;  %v1219_v21 = vmul.f32 -1.442695, %v2024_v11 }
 0x167   : > { %v1439_v34 = vpop.eup %1438  ;;  %1458 = vrcp.f32 %v887_v26  ;;  %v892_v35 = vadd.f32 1.0, %v1437_v29  ;;  %v1301_v45 = vpop.f32.mrb[12].mxu1  ;;  %v2044_v25 = vadd.f32 %v1285_v39, %v1912_v24 }
 0x168   : > { %v1441_v40 = vpop.eup %1440  ;;  %1460 = vrcp.f32 %v903_v30  ;;  %v908_v41 = vadd.f32 1.0, %v1439_v34  ;;  %v1982_v46 = vpop.f32.mrb[13].mxu0  ;;  %v2050_v29 = vadd.f32 %v1301_v45, %v1912_v24  ;;  %v1201_v34 = vmul.f32 -1.442695, %v2031_v19 }
 0x169   : > { %v1443_v47 = vpop.eup %1442  ;;  %1462 = vrcp.f32 %v892_v35  ;;  %v890_v48 = vadd.f32 1.0, %v1441_v40  ;;  %v1987_v50 = vpop.f32.mrb[13].mxu1 }
 0x16a   : > { %v1989_v53 = vpop.f32.mrb[14].mxu0  ;;  %v1445_v54 = vpop.eup %1444  ;;  %1464 = vrcp.f32 %v908_v41  ;;  %v906_v57 = vadd.f32 1.0, %v1443_v47 }
 0x16b   : > { %v1995_v60 = vpop.f32.mrb[14].mxu1  ;;  %v1997_v62 = vpop.f32.mrb[15].mxu0  ;;  %1466 = vrcp.f32 %v890_v48  ;;  %v893_v0 = vadd.f32 1.0, %v1445_v54 }
 0x16c   : > { %v1447_v63 = vpop.eup %1446  ;;  %v2003_v3 = vpop.f32.mrb[15].mxu1  ;;  %1468 = vrcp.f32 %v906_v57 }
 0x16d   : > { %v1449_v4 = vpop.eup %1448  ;;  %v984_v5 = vmul.f32 %v1447_v63, %v1915_v27  ;;  %1470 = vrcp.f32 %v893_v0 }
 0x16e   : > { %v1451_v8 = vpop.eup %1450  ;;  %v1000_v9 = vmul.f32 %v1449_v4, %v1918_v28  ;;  %1472 = vpow2.f32 %v1215_v58  ;;  %v1218_v28 = vmul.f32 -1.442695, %v1993_v59 }
 0x16f   : > { %v1453_v13 = vpop.eup %1452  ;;  %1016 = vst [vmem:[%s2017_s10 + $0x10] sm:$0xff] %v984_v5  ;;  %v982_v27 = vmul.f32 %v1451_v8, %v1921_v31  ;;  %1474 = vpow2.f32 %v1197_v1 }
 0x170   : > { %v1455_v14 = vpop.eup %1454  ;;  %1032 = vst [vmem:[%s2017_s10 + $0x90] sm:$0xff] %v1000_v9  ;;  %v998_v16 = vmul.f32 %v1453_v13, %v1924_v32  ;;  %1476 = vpow2.f32 %v1213_v6 }
 0x171   : > { %v1457_v31 = vpop.eup %1456  ;;  %1014 = vst [vmem:[%s2017_s10] sm:$0xff] %v982_v27  ;;  %v985_v20 = vmul.f32 %v1455_v14, %v1929_v37  ;;  %1478 = vpow2.f32 %v1202_v12  ;;  %v2072_v14 = vadd.f32 %v1912_v24, %v1982_v46  ;;  %v2084_v46 = vadd.f32 %v1995_v60, %v1912_v24 }
 0x172   : > { %v1459_v32 = vpop.eup %1458  ;;  %1030 = vst [vmem:[%s2017_s10 + $0x80] sm:$0xff] %v998_v16  ;;  %v1001_v23 = vmul.f32 %v1457_v31, %v1932_v38  ;;  %1480 = vpow2.f32 %v1218_v28  ;;  %v2076_v31 = vadd.f32 %v1912_v24, %v1987_v50  ;;  %v2094_v60 = vadd.f32 %v1912_v24, %v2003_v3 }
 0x173   : > { %v1461_v37 = vpop.eup %1460  ;;  %1017 = vst [vmem:[%s2017_s10 + $0x18] sm:$0xff] %v985_v20  ;;  %v983_v26 = vmul.f32 %v1459_v32, %v1937_v43  ;;  %1482 = vpow2.f32 %v1200_v17  ;;  %v1217_v43 = vmul.f32 -1.442695, %v2038_v22  ;;  %v2080_v32 = vadd.f32 %v1989_v53, %v1912_v24 }
 0x174   : > { %v1463_v30 = vpop.eup %1462  ;;  %1033 = vst [vmem:[%s2017_s10 + $0x98] sm:$0xff] %v1001_v23  ;;  %v999_v38 = vmul.f32 %v1461_v37, %v1940_v44  ;;  %1484 = vpow2.f32 %v1216_v15  ;;  %v1206_v44 = vmul.f32 -1.442695, %v2044_v25  ;;  %v1204_v50 = vmul.f32 -1.442695, %v2072_v14 }
 0x175   : > { %v1465_v35 = vpop.eup %1464  ;;  %1015 = vst [vmem:[%s2017_s10 + $0x8] sm:$0xff] %v983_v26  ;;  %v988_v39 = vmul.f32 %v1463_v30, %v1947_v51  ;;  %1486 = vpow2.f32 %v1203_v18  ;;  %v1222_v51 = vmul.f32 -1.442695, %v2050_v29 }
 0x176   : > { %v1467_v40 = vpop.eup %1466  ;;  %1031 = vst [vmem:[%s2017_s10 + $0x88] sm:$0xff] %v999_v38  ;;  %v1004_v41 = vmul.f32 %v1465_v35, %v1950_v52  ;;  %1488 = vpow2.f32 %v1219_v21  ;;  %v2089_v21 = vadd.f32 %v1912_v24, %v1997_v62  ;;  %v1220_v38 = vmul.f32 -1.442695, %v2076_v31 }
 0x177   : > { %v1469_v45 = vpop.eup %1468  ;;  %1020 = vst [vmem:[%s2017_s10 + $0x30] sm:$0xff] %v988_v39  ;;  %v986_v47 = vmul.f32 %v1467_v40, %v1953_v55  ;;  %1490 = vpow2.f32 %v1201_v34  ;;  %v1207_v39 = vmul.f32 -1.442695, %v2080_v32  ;;  %v1223_v40 = vmul.f32 -1.442695, %v2084_v46 }
 0x178   : > { %v1471_v48 = vpop.eup %1470  ;;  %1036 = vst [vmem:[%s2017_s10 + $0xb0] sm:$0xff] %v1004_v41  ;;  %v1002_v54 = vmul.f32 %v1469_v45, %v1956_v56  ;;  %1492 = vpow2.f32 %v1217_v43  ;;  %v1205_v24 = vmul.f32 -1.442695, %v2089_v21 }
 0x179   : > { %v1473_v57 = vpop.eup %1472  ;;  %1018 = vst [vmem:[%s2017_s10 + $0x20] sm:$0xff] %v986_v47  ;;  %v989_v52 = vmul.f32 %v1471_v48, %v1961_v61  ;;  %1494 = vpow2.f32 %v1206_v44 }
 0x17a   : > { %v1475_v58 = vpop.eup %1474  ;;  %1034 = vst [vmem:[%s2017_s10 + $0xa0] sm:$0xff] %v1002_v54  ;;  %v909_v63 = vadd.f32 1.0, %v1473_v57  ;;  %1496 = vpow2.f32 %v1222_v51 }
 0x17b   : > { %v1477_v0 = vpop.eup %1476  ;;  %1021 = vst [vmem:[%s2017_s10 + $0x38] sm:$0xff] %v989_v52  ;;  %v891_v55 = vadd.f32 1.0, %v1475_v58 }
 0x17c   : > { %v1479_v1 = vpop.eup %1478  ;;  %1498 = vrcp.f32 %v909_v63  ;;  %v907_v4 = vadd.f32 1.0, %v1477_v0 }
 0x17d   : > { %v1481_v5 = vpop.eup %1480  ;;  %1500 = vrcp.f32 %v891_v55  ;;  %v896_v56 = vadd.f32 1.0, %v1479_v1 }
 0x17e   : > { %v1483_v6 = vpop.eup %1482  ;;  %1502 = vrcp.f32 %v907_v4  ;;  %v912_v8 = vadd.f32 1.0, %v1481_v5 }
 0x17f   : > { %v1485_v9 = vpop.eup %1484  ;;  %1504 = vrcp.f32 %v896_v56  ;;  %v894_v61 = vadd.f32 1.0, %v1483_v6 }
 0x180   : > { %v1487_v12 = vpop.eup %1486  ;;  %1506 = vrcp.f32 %v912_v8  ;;  %v910_v13 = vadd.f32 1.0, %v1485_v9 }
 0x181   : > { %v1489_v27 = vpop.eup %1488  ;;  %1508 = vrcp.f32 %v894_v61  ;;  %v897_v28 = vadd.f32 1.0, %v1487_v12 }
 0x182   : > { %v1491_v16 = vpop.eup %1490  ;;  %1510 = vrcp.f32 %v910_v13  ;;  %v913_v17 = vadd.f32 1.0, %v1489_v27 }
 0x183   : > { %v1493_v20 = vpop.eup %1492  ;;  %1512 = vrcp.f32 %v897_v28  ;;  %v895_v15 = vadd.f32 1.0, %v1491_v16 }
 0x184   : > { %v1495_v23 = vpop.eup %1494  ;;  %1514 = vrcp.f32 %v913_v17  ;;  %v911_v18 = vadd.f32 1.0, %v1493_v20 }
 0x185   : > { %v1497_v37 = vpop.eup %1496  ;;  %1516 = vrcp.f32 %v895_v15  ;;  %v900_v26 = vadd.f32 1.0, %v1495_v23 }
 0x186   : > { %v1499_v30 = vpop.eup %1498  ;;  %1518 = vrcp.f32 %v911_v18  ;;  %v916_v53 = vadd.f32 1.0, %v1497_v37 }
 0x187   : > { %v1501_v34 = vpop.eup %1500  ;;  %v1005_v35 = vmul.f32 %v1499_v30, %v1973_v33  ;;  %1520 = vrcp.f32 %v900_v26 }
 0x188   : > { %v1503_v43 = vpop.eup %1502  ;;  %v987_v62 = vmul.f32 %v1501_v34, %v1976_v36  ;;  %1522 = vrcp.f32 %v916_v53  ;;  %v1221_v36 = vmul.f32 -1.442695, %v2094_v60 }
 0x189   : > { %v1505_v41 = vpop.eup %1504  ;;  %1037 = vst [vmem:[%s2017_s10 + $0xb8] sm:$0xff] %v1005_v35  ;;  %v1003_v44 = vmul.f32 %v1503_v43, %v1980_v42  ;;  %1524 = vpow2.f32 %v1204_v50 }
 0x18a   : > { %v1507_v33 = vpop.eup %1506  ;;  %1019 = vst [vmem:[%s2017_s10 + $0x28] sm:$0xff] %v987_v62  ;;  %v992_v3 = vmul.f32 %v1505_v41, %v1985_v49  ;;  %1526 = vpow2.f32 %v1220_v38 }
 0x18b   : > { %v1509_v45 = vpop.eup %1508  ;;  %1035 = vst [vmem:[%s2017_s10 + $0xa8] sm:$0xff] %v1003_v44  ;;  %v1008_v47 = vmul.f32 %v1507_v33, %v1993_v59  ;;  %1528 = vpow2.f32 %v1207_v39 }
 0x18c   : > { %v1511_v51 = vpop.eup %1510  ;;  %1024 = vst [vmem:[%s2017_s10 + $0x50] sm:$0xff] %v992_v3  ;;  %v990_v42 = vmul.f32 %v1509_v45, %v2001_v2  ;;  %1530 = vpow2.f32 %v1223_v40 }
 0x18d   : > { %v1513_v48 = vpop.eup %1512  ;;  %1040 = vst [vmem:[%s2017_s10 + $0xd0] sm:$0xff] %v1008_v47  ;;  %v1006_v49 = vmul.f32 %v1511_v51, %v2008_v7  ;;  %1532 = vpow2.f32 %v1205_v24 }
 0x18e   : > { %v1515_v54 = vpop.eup %1514  ;;  %1022 = vst [vmem:[%s2017_s10 + $0x40] sm:$0xff] %v990_v42  ;;  %v993_v57 = vmul.f32 %v1513_v48, %v2013_v10  ;;  %1534 = vpow2.f32 %v1221_v36 }
 0x18f   : > { %v1517_v59 = vpop.eup %1516  ;;  %1038 = vst [vmem:[%s2017_s10 + $0xc0] sm:$0xff] %v1006_v49  ;;  %v1009_v52 = vmul.f32 %v1515_v54, %v2024_v11 }
 0x190   : > { %v1519_v2 = vpop.eup %1518  ;;  %1025 = vst [vmem:[%s2017_s10 + $0x58] sm:$0xff] %v993_v57  ;;  %v991_v58 = vmul.f32 %v1517_v59, %v2031_v19 }
 0x191   : > { %v1521_v63 = vpop.eup %1520  ;;  %1041 = vst [vmem:[%s2017_s10 + $0xd8] sm:$0xff] %v1009_v52  ;;  %v1007_v7 = vmul.f32 %v1519_v2, %v2038_v22 }
 0x192   : > { %v1523_v0 = vpop.eup %1522  ;;  %1023 = vst [vmem:[%s2017_s10 + $0x48] sm:$0xff] %v991_v58  ;;  %v996_v55 = vmul.f32 %v1521_v63, %v2044_v25 }
 0x193   : > { %v1525_v10 = vpop.eup %1524  ;;  %1039 = vst [vmem:[%s2017_s10 + $0xc8] sm:$0xff] %v1007_v7  ;;  %v1012_v1 = vmul.f32 %v1523_v0, %v2050_v29 }
 0x194   : > { %v1527_v4 = vpop.eup %1526  ;;  %1028 = vst [vmem:[%s2017_s10 + $0x70] sm:$0xff] %v996_v55  ;;  %v898_v11 = vadd.f32 1.0, %v1525_v10 }
 0x195   : > { %v1529_v5 = vpop.eup %1528  ;;  %1044 = vst [vmem:[%s2017_s10 + $0xf0] sm:$0xff] %v1012_v1  ;;  %v914_v56 = vadd.f32 1.0, %v1527_v4 }
 0x196   : > { %v1531_v6 = vpop.eup %1530  ;;  %1536 = vrcp.f32 %v898_v11  ;;  %v901_v19 = vadd.f32 1.0, %v1529_v5 }
 0x197   : > { %v1533_v8 = vpop.eup %1532  ;;  %1538 = vrcp.f32 %v914_v56  ;;  %v917_v22 = vadd.f32 1.0, %v1531_v6 }
 0x198   : > { %v1535_v25 = vpop.eup %1534  ;;  %1540 = vrcp.f32 %v901_v19  ;;  %v899_v9 = vadd.f32 1.0, %v1533_v8 }
 0x199   : > { %1542 = vrcp.f32 %v917_v22  ;;  %v915_v29 = vadd.f32 1.0, %v1535_v25 }
 0x19a   : > { %1544 = vrcp.f32 %v899_v9 }
 0x19b   : > { %1546 = vrcp.f32 %v915_v29 }
 0x1a0   : > { %v1537_v61 = vpop.eup %1536 }
 0x1a1   : > { %v1539_v12 = vpop.eup %1538  ;;  %v994_v13 = vmul.f32 %v1537_v61, %v2072_v14 }
 0x1a2   : > { %v1541_v27 = vpop.eup %1540  ;;  %v1010_v28 = vmul.f32 %v1539_v12, %v2076_v31 }
 0x1a3   : > { %v1543_v16 = vpop.eup %1542  ;;  %1026 = vst [vmem:[%s2017_s10 + $0x60] sm:$0xff] %v994_v13  ;;  %v997_v17 = vmul.f32 %v1541_v27, %v2080_v32 }
 0x1a4   : > { %v1545_v20 = vpop.eup %1544  ;;  %1042 = vst [vmem:[%s2017_s10 + $0xe0] sm:$0xff] %v1010_v28  ;;  %v1013_v15 = vmul.f32 %v1543_v16, %v2084_v46 }
 0x1a5   : > { %v1547_v23 = vpop.eup %1546  ;;  %1029 = vst [vmem:[%s2017_s10 + $0x78] sm:$0xff] %v997_v17  ;;  %v995_v14 = vmul.f32 %v1545_v20, %v2089_v21 }
 0x1a6   : > { %1045 = vst [vmem:[%s2017_s10 + $0xf8] sm:$0xff] %v1013_v15  ;;  %v1011_v31 = vmul.f32 %v1547_v23, %v2094_v60 }
 0x1a7   : > { %1027 = vst [vmem:[%s2017_s10 + $0x68] sm:$0xff] %v995_v14 }
 0x1a8   : > { %1043 = vst [vmem:[%s2017_s10 + $0xe8] sm:$0xff] %v1011_v31 }
 0x1a9   : > { %1619 = shalt.err (!%p1616_p5)
}
 0x1aa   : > { %s1620_s29 = scalar_lea.hbm %s2139_s15, 4096  ;;  %s1624_s20 = scalar_lea.hbm %s2197_s3, 8192 }
 0x1ab   : > { %p1621_p9 = scmp.ne.s32.totalorder %s2139_s15, %s1620_s29  ;;  %p1625_p3 = scmp.lt.u32.totalorder %s2139_s15, %s2197_s3 }
 0x1ac   : > { %p1626_p7 = scmp.lt.u32.totalorder %s1624_s20, %s1620_s29  ;;  %p1628_p4 = scmp.lt.u32.totalorder %s1620_s29, %s2139_s15 }
 0x1ad   : > { %p1622_p1 = pnand %p1621_p9, %p1820_p10 }
 0x1ae   : > { %p1627_p13 = por %p1626_p7, %p1625_p3 }
 0x1af   : > { %p1623_p2 = pneg %p1622_p1 }
 0x1b0   : > { %p1629_p6 = por %p1628_p4, %p1627_p13 }
 0x1b2   : > { %p1630_p8 = pnand %p1629_p6, %p1623_p2 }
 0x1b4   : > { %1633 = shalt.err (!%p1630_p8)
}
 0x1b5   : > { %s1699_s10 = smov 128   ;;  %s1700_s11 = smov 8  }
 0x1b6   : > { %1325 = dma.vmem_to_hbm [thread:$0]  (%p1820_p10), %s2141_s9, 4096, %s2139_s15, %s1047_s25, %s1699_s10, %s1699_s10, %s1700_s11  }
 0x1b7 PF: > { %s1075_s18 = sand.u32 1, %s1672_s12   ;;  %p2215_p12 = scmp.ne.s32.totalorder %s2205_s23, 0 }
 0x1b8   : > { %p2216_p11 = scmp.ge.s32.totalorder %s1692_s17, 2  ;;  %s1076_s19 = scalar_lea.sflag [#allocation5], %s1075_s18 }
 0x1ba   : > { %p1336_p0 = pnand %p2216_p11, %p2215_p12 }
 0x1bc   : > { %1667 = dma.done.wait (!%p1336_p0), %s1076_s19, 4096  }
 0x1bd   : > { %1669 = vsyncadd (!%p1336_p0), %s1076_s19, 4294963200  ;;  %s20_s17 = sadd.s32 1, %s1692_s17   ;;  %s2217_s12 = smov %s1676_s13 }
 0x1be   : > { %p17_p5 = scmp.ge.s32.totalorder %s20_s17, 4   ;;  %s2218_s13 = smov %s1680_s14 }
 0x1bf   : > { %s2219_s14 = smov %s1829_s5  ;;  %s2220_s15 = smov %s1688_s16 }
 0x1c0   : > { %s2221_s16 = smov %s2223_s28  ;;  %19 = sbr.rel (!%p17_p5) target bundleno = 7 (0x7), region = 90 }
 0x1c7   :  { %1081 = vsyncpa [#allocation4], 1 }
 0x1c8   :  { %1083 = vsyncpa [#allocation4 + $0x1], 1 }
 0x1c9   :  { %1084 = vsyncpa [#allocation7], 1 }
 0x1ca   :  { %1085 = vsyncpa [#allocation5], 1 }
 0x1cb   :  { %1087 = vsyncpa [#allocation5 + $0x1], 1 }

</bundles_post_ra>
